<compile_context>
chip_gen: v5e
topology: v5e:2x2
jax: 0.10.0
libtpu: 0.0.40
codegen_flags: <defaults>
</compile_context>

<pallas_src>
import jax
import jax.numpy as jnp
from jax.experimental import pallas as pl
from jax.experimental.pallas import tpu as pltpu

LN_EPS = 1e-5  # torch.nn.LayerNorm default


# --------------------------------------------------------------------------
# Kernel
# --------------------------------------------------------------------------
def actor_kernel(x_ref, wf_ref, w2a_ref, w3_ref, lnp_ref, out_ref):
    hidden1 = w2a_ref.shape[0]
    hidden2 = w2a_ref.shape[1]

    # Packed LN / bias params: rows 0..5 = b1, g1, be1, b2, g2, be2 (rows 6..7 pad).
    b1 = lnp_ref[0:1, :hidden1]
    g1 = lnp_ref[1:2, :hidden1]
    be1 = lnp_ref[2:3, :hidden1]
    b2 = lnp_ref[3:4, :hidden2]
    g2 = lnp_ref[4:5, :hidden2]
    be2 = lnp_ref[5:6, :hidden2]

    # Constant reducer matrices: (h @ redN) puts the row-mean in every column,
    # i.e. the LN reductions run on the MXU instead of the XLU.
    red1 = jnp.full((hidden1, hidden1), 1.0 / hidden1, dtype=jnp.float32)
    red2 = jnp.full((hidden2, hidden2), 1.0 / hidden2, dtype=jnp.float32)

    x = x_ref[...]
    x_mx = x.astype(wf_ref.dtype)  # cast to the MXU operand dtype in-VMEM

    # Fused block-diagonal matmul: z[:, :h1] = laser @ W1^T, z[:, h1:] = pos @ W2b^T
    z = jnp.dot(x_mx, wf_ref[...], preferred_element_type=jnp.float32)

    # ---- LN1 + relu (f32 math) ----
    h1p = z[:, :hidden1] + b1
    mu1 = jnp.dot(h1p, red1, preferred_element_type=jnp.float32)        # all cols = mean
    d1 = h1p - mu1
    var1 = jnp.dot(d1 * d1, red1, preferred_element_type=jnp.float32)   # all cols = var
    inv1 = jax.lax.rsqrt(var1[:, :1] + LN_EPS)                          # narrow rsqrt
    h1 = jnp.maximum(d1 * inv1 * g1 + be1, 0.0)

    # ---- fc2: h1 @ W2a^T + (pos contribution already in z) + b2, LN2 + relu ----
    h2p = (jnp.dot(h1.astype(w2a_ref.dtype), w2a_ref[...],
                   preferred_element_type=jnp.float32)
           + z[:, hidden1:] + b2)
    mu2 = jnp.dot(h2p, red2, preferred_element_type=jnp.float32)
    d2 = h2p - mu2
    var2 = jnp.dot(d2 * d2, red2, preferred_element_type=jnp.float32)
    inv2 = jax.lax.rsqrt(var2[:, :1] + LN_EPS)
    h2 = jnp.maximum(d2 * inv2 * g2 + be2, 0.0)

    # ---- fc3 (no bias) + softsign ----
    y = jnp.dot(h2.astype(w3_ref.dtype), w3_ref[...],
                preferred_element_type=jnp.float32)
    # softsign: y / (1 + |y|); exact reciprocal so the 1e-5 tolerance holds.
    out_ref[...] = y * pl.reciprocal(1.0 + jnp.abs(y), approx=False)


# --------------------------------------------------------------------------
# Wrapper
# --------------------------------------------------------------------------
def _round_up(x, m):
    return (x + m - 1) // m * m


def actor_forward(pos, laser, packed, *, block_b=4096):
    """Runs the Actor MLP as one Pallas call, tiled over the batch dimension.

    `packed` comes from pack_actor_params (weights possibly pre-cast to bf16 —
    recommended on all TPU generations; activations stay in their input dtype
    and are cast inside the kernel).  Sweep block_b in {2048, 4096, 8192}.
    """
    wf, w2at, w3t, lnp = packed["wf"], packed["w2at"], packed["w3t"], packed["lnp"]

    B, nb_pos = pos.shape
    nb_laser = laser.shape[1]
    feat_in = nb_laser + nb_pos
    assert wf.shape[0] == feat_in, (wf.shape, feat_in)
    hidden1, hidden2 = w2at.shape
    nb_actions = w3t.shape[1]

    # Single lane-dense input slab [laser | pos] feeding the fused matmul.
    # (No per-call dtype cast here — that would add an extra HBM round-trip.)
    x = jnp.concatenate([laser.astype(jnp.float32), pos.astype(jnp.float32)], axis=1)

    # Sublane alignment: 16 when the MXU operand dtype is bf16, else 8.
    sub = 16 if wf.dtype == jnp.bfloat16 else 8

    # --- VMEM-aware batch tile selection -------------------------------------
    def _lp(n):  # lane-padded width
        return _round_up(max(int(n), 1), 128)

    # per-row VMEM estimate: double-buffered in/out tiles + ~8 f32 temp slabs
    row_bytes = (2 * _lp(feat_in) + 2 * _lp(nb_actions) + 8 * _lp(hidden1 + hidden2)) * 4
    tile_budget = 36 * 1024 * 1024                       # keeps v7x (64 MiB) safe
    tb_cap = max(sub, (tile_budget // row_bytes) // sub * sub)

    b_al = _round_up(B, sub)
    tb = max(sub, min(block_b, b_al, tb_cap))
    tb = _round_up(tb, sub)
    # Ensure >=2 grid steps when the batch allows it, so v7x's two TensorCores
    # both get work on the "parallel" batch axis (near-free on 1-TC chips).
    if tb >= b_al and b_al >= 2 * sub:
        tb = _round_up((b_al + 1) // 2, sub)
    b_pad = _round_up(b_al, tb)

    if b_pad != B:
        # Padded zero rows: LN sees var=0 -> rsqrt(1e-5) (finite); rows sliced off.
        x = jnp.pad(x, ((0, b_pad - B), (0, 0)))
    grid = (b_pad // tb,)

    # --- specs ----------------------------------------------------------------
    def const_spec(arr):
        # full-array, constant index_map: VMEM-resident, DMA'd once
        return pl.BlockSpec(arr.shape, lambda i: (0, 0))

    in_specs = [
        pl.BlockSpec((tb, feat_in), lambda i: (i, 0)),   # batch-tiled activations
        const_spec(wf), const_spec(w2at), const_spec(w3t), const_spec(lnp),
    ]
    out_specs = pl.BlockSpec((tb, nb_actions), lambda i: (i, 0))

    # --- vmem limit derived from the tile size (cap for v7x's 64 MiB) --------
    w_bytes = sum(int(a.size) * a.dtype.itemsize for a in (wf, w2at, w3t, lnp))
    vmem_need = tb * row_bytes + 2 * w_bytes + (2 << 20)
    vmem_limit = int(min(max(vmem_need, 32 << 20), 48 << 20))

    # --- cost estimate --------------------------------------------------------
    flops = 2 * b_pad * (feat_in * (hidden1 + hidden2)       # fused block-diag dot
                         + hidden1 * hidden2                 # fc2 (h1 part)
                         + hidden2 * nb_actions              # fc3
                         + 2 * hidden1 * hidden1             # LN1 mean+var reducer dots
                         + 2 * hidden2 * hidden2)            # LN2 mean+var reducer dots
    transcendentals = b_pad * (2 + nb_actions)               # 2 rsqrt + softsign recip
    bytes_accessed = (b_pad * feat_in * x.dtype.itemsize     # activation reads
                      + b_pad * nb_actions * 4               # output writes
                      + w_bytes)                             # weights (once)
    cost = pl.CostEstimate(flops=flops, transcendentals=transcendentals,
                           bytes_accessed=bytes_accessed)

    out = pl.pallas_call(
        actor_kernel,
        out_shape=jax.ShapeDtypeStruct((b_pad, nb_actions), jnp.float32),
        grid=grid,
        in_specs=in_specs,
        out_specs=out_specs,
        compiler_params=pltpu.CompilerParams(
            dimension_semantics=("parallel",),   # batch axis -> split over TCs on v7x
            vmem_limit_bytes=vmem_limit),
        cost_estimate=cost,
    )(x, wf, w2at, w3t, lnp)
    return out[:B]


# --------------------------------------------------------------------------
# Parameter init (torch layout) and packing into the kernel layout
# --------------------------------------------------------------------------
def init_actor_raw_params(key, nb_pos, nb_laser, nb_actions,
                          hidden1=64, hidden2=64, init_w=0.003):
    """Torch-layout params mirroring the PyTorch module's init_weights."""
    ks = jax.random.split(key, 5)

    def uniform(k, shape, bound):
        return jax.random.uniform(k, shape, jnp.float32, -bound, bound)

    # fanin_init uses size[0] of the torch weight (out_features) as fanin.
    w1 = uniform(ks[0], (hidden1, nb_laser), 1.0 / (hidden1 ** 0.5))
    b1 = uniform(ks[1], (hidden1,), 1.0 / (nb_laser ** 0.5))            # Linear bias default
    w2 = uniform(ks[2], (hidden2, hidden1 + nb_pos), 1.0 / (hidden2 ** 0.5))
    b2 = uniform(ks[3], (hidden2,), 1.0 / ((hidden1 + nb_pos) ** 0.5))
    w3 = uniform(ks[4], (nb_actions, hidden2), init_w)

    return {
        "w1": w1, "b1": b1,
        "w2": w2, "b2": b2,
        "w3": w3,
        "g1": jnp.ones((hidden1,), jnp.float32), "be1": jnp.zeros((hidden1,), jnp.float32),
        "g2": jnp.ones((hidden2,), jnp.float32), "be2": jnp.zeros((hidden2,), jnp.float32),
    }


def pack_actor_params(raw, compute_dtype=jnp.float32):
    """Packs torch-layout params into the kernel layout (cast weights ONCE here).

    compute_dtype=jnp.bfloat16 halves MXU-operand weight bytes and is beneficial
    on all generations (v5e's MXU is natively bf16); LN/relu/softsign math stays f32.
    """
    w1, b1 = raw["w1"], raw["b1"]
    w2, b2 = raw["w2"], raw["b2"]
    w3 = raw["w3"]
    g1, be1, g2, be2 = raw["g1"], raw["be1"], raw["g2"], raw["be2"]

    hidden1, nb_laser = w1.shape
    hidden2 = w2.shape[0]
    nb_pos = w2.shape[1] - hidden1

    # Fused block-diagonal weight for x = [laser | pos]:
    #   x @ wf = [ laser @ W1^T | pos @ W2b^T ]
    wf = jnp.zeros((nb_laser + nb_pos, hidden1 + hidden2), jnp.float32)
    wf = wf.at[:nb_laser, :hidden1].set(w1.T)
    wf = wf.at[nb_laser:, hidden1:].set(w2[:, hidden1:].T)

    w2at = w2[:, :hidden1].T          # [hidden1, hidden2]  (h1 part of the concat)
    w3t = w3.T                        # [hidden2, nb_actions]

    # One packed (8, H) block for all biases / LN affine params (single DMA).
    maxh = max(hidden1, hidden2)
    lnp = jnp.zeros((8, maxh), jnp.float32)
    lnp = lnp.at[0, :hidden1].set(b1)
    lnp = lnp.at[1, :hidden1].set(g1)
    lnp = lnp.at[2, :hidden1].set(be1)
    lnp = lnp.at[3, :hidden2].set(b2)
    lnp = lnp.at[4, :hidden2].set(g2)
    lnp = lnp.at[5, :hidden2].set(be2)

    return {
        "wf": wf.astype(compute_dtype),
        "w2at": w2at.astype(compute_dtype),
        "w3t": w3t.astype(compute_dtype),
        "lnp": lnp,                                  # f32 always
    }


# --------------------------------------------------------------------------
# Pure-JAX reference (f32) for correctness checking
# --------------------------------------------------------------------------
def actor_reference(pos, laser, raw):
    def ln(x, g, b):
        mu = jnp.mean(x, axis=-1, keepdims=True)
        var = jnp.mean((x - mu) ** 2, axis=-1, keepdims=True)
        return (x - mu) * jax.lax.rsqrt(var + LN_EPS) * g + b

    h1 = jax.nn.relu(ln(laser @ raw["w1"].T + raw["b1"], raw["g1"], raw["be1"]))
    cat = jnp.concatenate([h1, pos], axis=1)
    h2 = jax.nn.relu(ln(cat @ raw["w2"].T + raw["b2"], raw["g2"], raw["be2"]))
    y = h2 @ raw["w3"].T
    return y / (1.0 + jnp.abs(y))


# --------------------------------------------------------------------------
if __name__ == "__main__":
    nb_pos, nb_laser, nb_actions = 4, 32, 2
    key = jax.random.PRNGKey(0)
    kp, kl, kw = jax.random.split(key, 3)
    raw = init_actor_raw_params(kw, nb_pos, nb_laser, nb_actions)
    packed_f32 = pack_actor_params(raw, compute_dtype=jnp.float32)
    packed_bf16 = pack_actor_params(raw, compute_dtype=jnp.bfloat16)

    # --- small batch, f32 path (single grid step) ---
    B = 2
    pos = jax.random.normal(kp, (B, nb_pos), jnp.float32)
    laser = jax.random.normal(kl, (B, nb_laser), jnp.float32)

    out = jax.block_until_ready(actor_forward(pos, laser, packed_f32))
    ref = actor_reference(pos, laser, raw)
    assert out.shape == (B, nb_actions)
    assert jnp.allclose(out, ref, atol=1e-5, rtol=1e-5), (out, ref)

    # --- larger ragged batch exercising multi-step grid + padding ---
    B2 = 300
    kp2, kl2 = jax.random.split(jax.random.PRNGKey(1))
    pos2 = jax.random.normal(kp2, (B2, nb_pos), jnp.float32)
    laser2 = jax.random.normal(kl2, (B2, nb_laser), jnp.float32)
    ref2 = actor_reference(pos2, laser2, raw)

    out2 = jax.block_until_ready(
        actor_forward(pos2, laser2, packed_f32, block_b=128))     # 3-step grid
    assert out2.shape == (B2, nb_actions)
    assert jnp.allclose(out2, ref2, atol=1e-5, rtol=1e-5)

    out3 = jax.block_until_ready(
        actor_forward(pos2, laser2, packed_f32))                  # 2-step split path
    assert jnp.allclose(out3, ref2, atol=1e-5, rtol=1e-5)

    # --- bf16 MXU-operand path (all generations), looser tolerance ---
    out_bf16 = jax.block_until_ready(
        actor_forward(pos2, laser2, packed_bf16, block_b=128))
    assert out_bf16.shape == (B2, nb_actions)
    assert jnp.allclose(out_bf16, ref2, atol=5e-2, rtol=5e-2)

    print("KERNEL_OK")
</pallas_src>

<mosaic_0001>
module attributes {stable_mosaic.version = 11 : i64} {
  func.func @actor_kernel(%arg0: i32, %arg1: memref<8x36xf32, #tpu.memory_space<vmem>>, %arg2: memref<36x128xf32, #tpu.memory_space<vmem>>, %arg3: memref<64x64xf32, #tpu.memory_space<vmem>>, %arg4: memref<64x2xf32, #tpu.memory_space<vmem>>, %arg5: memref<8x64xf32, #tpu.memory_space<vmem>>, %arg6: memref<8x2xf32, #tpu.memory_space<vmem>>) attributes {dimension_semantics = [#tpu.dimension_semantics<parallel>], iteration_bounds = array<i64: 1>, scalar_prefetch = 0 : i64, scratch_operands = 0 : i64, tpu.core_type = #tpu.core_type<tc>, window_params = [{transform_indices = @transform_0, window_bounds = array<i64: 8, 36>}, {pipeline_mode = #tpu.pipeline_mode<synchronous>, transform_indices = @transform_1, window_bounds = array<i64: 36, 128>}, {pipeline_mode = #tpu.pipeline_mode<synchronous>, transform_indices = @transform_2, window_bounds = array<i64: 64, 64>}, {pipeline_mode = #tpu.pipeline_mode<synchronous>, transform_indices = @transform_3, window_bounds = array<i64: 64, 2>}, {pipeline_mode = #tpu.pipeline_mode<synchronous>, transform_indices = @transform_4, window_bounds = array<i64: 8, 64>}, {transform_indices = @transform_5, window_bounds = array<i64: 8, 2>}]} {
    %c0 = arith.constant 0 : index
    %c0_0 = arith.constant 0 : index
    %0 = vector.load %arg5[%c0, %c0_0] : memref<8x64xf32, #tpu.memory_space<vmem>>, vector<1x64xf32>
    %c1 = arith.constant 1 : index
    %c0_1 = arith.constant 0 : index
    %1 = vector.load %arg5[%c1, %c0_1] : memref<8x64xf32, #tpu.memory_space<vmem>>, vector<1x64xf32>
    %c2 = arith.constant 2 : index
    %c0_2 = arith.constant 0 : index
    %2 = vector.load %arg5[%c2, %c0_2] : memref<8x64xf32, #tpu.memory_space<vmem>>, vector<1x64xf32>
    %c3 = arith.constant 3 : index
    %c0_3 = arith.constant 0 : index
    %3 = vector.load %arg5[%c3, %c0_3] : memref<8x64xf32, #tpu.memory_space<vmem>>, vector<1x64xf32>
    %c4 = arith.constant 4 : index
    %c0_4 = arith.constant 0 : index
    %4 = vector.load %arg5[%c4, %c0_4] : memref<8x64xf32, #tpu.memory_space<vmem>>, vector<1x64xf32>
    %c5 = arith.constant 5 : index
    %c0_5 = arith.constant 0 : index
    %5 = vector.load %arg5[%c5, %c0_5] : memref<8x64xf32, #tpu.memory_space<vmem>>, vector<1x64xf32>
    %cst = arith.constant 1.562500e-02 : f32
    %6 = vector.broadcast %cst : f32 to vector<64x64xf32>
    %cst_6 = arith.constant 1.562500e-02 : f32
    %7 = vector.broadcast %cst_6 : f32 to vector<64x64xf32>
    %c0_7 = arith.constant 0 : index
    %c0_8 = arith.constant 0 : index
    %8 = vector.load %arg1[%c0_7, %c0_8] : memref<8x36xf32, #tpu.memory_space<vmem>>, vector<8x36xf32>
    %c0_9 = arith.constant 0 : index
    %c0_10 = arith.constant 0 : index
    %9 = vector.load %arg2[%c0_9, %c0_10] : memref<36x128xf32, #tpu.memory_space<vmem>>, vector<36x128xf32>
    %cst_11 = arith.constant dense<0.000000e+00> : vector<8x128xf32>
    %10 = tpu.matmul %8, %9, %cst_11 {dimension_numbers = #tpu.dot_dimension_numbers<[1], [0], [0], [1], [0, 0, 1, 1], [], []>} : vector<8x36xf32>, vector<36x128xf32>, vector<8x128xf32> -> vector<8x128xf32>
    %11 = vector.extract_strided_slice %10 {offsets = [0, 0], sizes = [8, 64], strides = [1, 1]} : vector<8x128xf32> to vector<8x64xf32>
    %12 = vector.broadcast %0 : vector<1x64xf32> to vector<8x64xf32>
    %13 = arith.addf %11, %12 : vector<8x64xf32>
    %cst_12 = arith.constant dense<0.000000e+00> : vector<8x64xf32>
    %14 = tpu.matmul %13, %6, %cst_12 {dimension_numbers = #tpu.dot_dimension_numbers<[1], [0], [0], [1], [0, 0, 1, 1], [], []>} : vector<8x64xf32>, vector<64x64xf32>, vector<8x64xf32> -> vector<8x64xf32>
    %15 = arith.subf %13, %14 : vector<8x64xf32>
    %16 = arith.mulf %15, %15 : vector<8x64xf32>
    %cst_13 = arith.constant dense<0.000000e+00> : vector<8x64xf32>
    %17 = tpu.matmul %16, %6, %cst_13 {dimension_numbers = #tpu.dot_dimension_numbers<[1], [0], [0], [1], [0, 0, 1, 1], [], []>} : vector<8x64xf32>, vector<64x64xf32>, vector<8x64xf32> -> vector<8x64xf32>
    %18 = vector.extract_strided_slice %17 {offsets = [0, 0], sizes = [8, 1], strides = [1, 1]} : vector<8x64xf32> to vector<8x1xf32>
    %cst_14 = arith.constant 9.99999974E-6 : f32
    %19 = vector.broadcast %cst_14 : f32 to vector<8x1xf32>
    %20 = arith.addf %18, %19 : vector<8x1xf32>
    %21 = math.rsqrt %20 : vector<8x1xf32>
    %22 = vector.broadcast %21 : vector<8x1xf32> to vector<8x64xf32>
    %23 = arith.mulf %15, %22 : vector<8x64xf32>
    %24 = vector.broadcast %1 : vector<1x64xf32> to vector<8x64xf32>
    %25 = arith.mulf %23, %24 : vector<8x64xf32>
    %26 = vector.broadcast %2 : vector<1x64xf32> to vector<8x64xf32>
    %27 = arith.addf %25, %26 : vector<8x64xf32>
    %cst_15 = arith.constant 0.000000e+00 : f32
    %28 = vector.broadcast %cst_15 : f32 to vector<8x64xf32>
    %29 = arith.maximumf %27, %28 : vector<8x64xf32>
    %c0_16 = arith.constant 0 : index
    %c0_17 = arith.constant 0 : index
    %30 = vector.load %arg3[%c0_16, %c0_17] : memref<64x64xf32, #tpu.memory_space<vmem>>, vector<64x64xf32>
    %cst_18 = arith.constant dense<0.000000e+00> : vector<8x64xf32>
    %31 = tpu.matmul %29, %30, %cst_18 {dimension_numbers = #tpu.dot_dimension_numbers<[1], [0], [0], [1], [0, 0, 1, 1], [], []>} : vector<8x64xf32>, vector<64x64xf32>, vector<8x64xf32> -> vector<8x64xf32>
    %32 = vector.extract_strided_slice %10 {offsets = [0, 64], sizes = [8, 64], strides = [1, 1]} : vector<8x128xf32> to vector<8x64xf32>
    %33 = arith.addf %31, %32 : vector<8x64xf32>
    %34 = vector.broadcast %3 : vector<1x64xf32> to vector<8x64xf32>
    %35 = arith.addf %33, %34 : vector<8x64xf32>
    %cst_19 = arith.constant dense<0.000000e+00> : vector<8x64xf32>
    %36 = tpu.matmul %35, %7, %cst_19 {dimension_numbers = #tpu.dot_dimension_numbers<[1], [0], [0], [1], [0, 0, 1, 1], [], []>} : vector<8x64xf32>, vector<64x64xf32>, vector<8x64xf32> -> vector<8x64xf32>
    %37 = arith.subf %35, %36 : vector<8x64xf32>
    %38 = arith.mulf %37, %37 : vector<8x64xf32>
    %cst_20 = arith.constant dense<0.000000e+00> : vector<8x64xf32>
    %39 = tpu.matmul %38, %7, %cst_20 {dimension_numbers = #tpu.dot_dimension_numbers<[1], [0], [0], [1], [0, 0, 1, 1], [], []>} : vector<8x64xf32>, vector<64x64xf32>, vector<8x64xf32> -> vector<8x64xf32>
    %40 = vector.extract_strided_slice %39 {offsets = [0, 0], sizes = [8, 1], strides = [1, 1]} : vector<8x64xf32> to vector<8x1xf32>
    %cst_21 = arith.constant 9.99999974E-6 : f32
    %41 = vector.broadcast %cst_21 : f32 to vector<8x1xf32>
    %42 = arith.addf %40, %41 : vector<8x1xf32>
    %43 = math.rsqrt %42 : vector<8x1xf32>
    %44 = vector.broadcast %43 : vector<8x1xf32> to vector<8x64xf32>
    %45 = arith.mulf %37, %44 : vector<8x64xf32>
    %46 = vector.broadcast %4 : vector<1x64xf32> to vector<8x64xf32>
    %47 = arith.mulf %45, %46 : vector<8x64xf32>
    %48 = vector.broadcast %5 : vector<1x64xf32> to vector<8x64xf32>
    %49 = arith.addf %47, %48 : vector<8x64xf32>
    %cst_22 = arith.constant 0.000000e+00 : f32
    %50 = vector.broadcast %cst_22 : f32 to vector<8x64xf32>
    %51 = arith.maximumf %49, %50 : vector<8x64xf32>
    %c0_23 = arith.constant 0 : index
    %c0_24 = arith.constant 0 : index
    %52 = vector.load %arg4[%c0_23, %c0_24] : memref<64x2xf32, #tpu.memory_space<vmem>>, vector<64x2xf32>
    %cst_25 = arith.constant dense<0.000000e+00> : vector<8x2xf32>
    %53 = tpu.matmul %51, %52, %cst_25 {dimension_numbers = #tpu.dot_dimension_numbers<[1], [0], [0], [1], [0, 0, 1, 1], [], []>} : vector<8x64xf32>, vector<64x2xf32>, vector<8x2xf32> -> vector<8x2xf32>
    %54 = math.absf %53 : vector<8x2xf32>
    %cst_26 = arith.constant 1.000000e+00 : f32
    %55 = vector.broadcast %cst_26 : f32 to vector<8x2xf32>
    %56 = arith.addf %55, %54 : vector<8x2xf32>
    %57 = tpu.reciprocal %56 : vector<8x2xf32> -> vector<8x2xf32>
    %58 = arith.mulf %53, %57 : vector<8x2xf32>
    %c0_27 = arith.constant 0 : index
    %c0_28 = arith.constant 0 : index
    %59 = vector.load %arg6[%c0_27, %c0_28] : memref<8x2xf32, #tpu.memory_space<vmem>>, vector<8x2xf32>
    tpu.vector_store %arg6[%c0_27, %c0_28], %58 {strides = array<i32>} : memref<8x2xf32, #tpu.memory_space<vmem>>, vector<8x2xf32>,
    return
  }
  func.func @transform_0(%arg0: i32) -> (i32, i32) {
    %c0_i32 = arith.constant 0 : i32
    %c0_i32_0 = arith.constant 0 : i32
    return %arg0, %c0_i32 : i32, i32
  }
  func.func @transform_1(%arg0: i32) -> (i32, i32) {
    %c0_i32 = arith.constant 0 : i32
    %c0_i32_0 = arith.constant 0 : i32
    %c0_i32_1 = arith.constant 0 : i32
    return %c0_i32, %c0_i32_0 : i32, i32
  }
  func.func @transform_2(%arg0: i32) -> (i32, i32) {
    %c0_i32 = arith.constant 0 : i32
    %c0_i32_0 = arith.constant 0 : i32
    %c0_i32_1 = arith.constant 0 : i32
    return %c0_i32, %c0_i32_0 : i32, i32
  }
  func.func @transform_3(%arg0: i32) -> (i32, i32) {
    %c0_i32 = arith.constant 0 : i32
    %c0_i32_0 = arith.constant 0 : i32
    %c0_i32_1 = arith.constant 0 : i32
    return %c0_i32, %c0_i32_0 : i32, i32
  }
  func.func @transform_4(%arg0: i32) -> (i32, i32) {
    %c0_i32 = arith.constant 0 : i32
    %c0_i32_0 = arith.constant 0 : i32
    %c0_i32_1 = arith.constant 0 : i32
    return %c0_i32, %c0_i32_0 : i32, i32
  }
  func.func @transform_5(%arg0: i32) -> (i32, i32) {
    %c0_i32 = arith.constant 0 : i32
    %c0_i32_0 = arith.constant 0 : i32
    return %arg0, %c0_i32 : i32, i32
  }
}

</mosaic_0001>

<bundles_post_ra>
// kernel: tpu_custom_call.1
= control target key start
LH: loop header
LB: loop body
LE: loop exit
PB: predicated region body
PF: predicated region fallthrough
CT: control target
= control target key end

     0   :  { %10 = vsyncpa [#allocation3], 0  ;;  %s549_s0 = inlined_call_operand.hbm [shape: f32[8,36], index: 0, kind: input, shape index: {}]   ;;  %s550_s1 = inlined_call_operand.hbm [shape: f32[36,128], index: 1, kind: input, shape index: {}]   ;;  %s551_s2 = inlined_call_operand.vmem [shape: f32[64,64], index: 2, kind: input, shape index: {}]   ;;  %s552_s3 = inlined_call_operand.vmem [shape: f32[64,2], index: 3, kind: input, shape index: {}]   ;;  %s553_s4 = inlined_call_operand.hbm [shape: f32[8,64], index: 4, kind: input, shape index: {}]   ;;  %s554_s5 = inlined_call_operand.vmem [shape: f32[8,2], index: 5, kind: output, shape index: {}]  }
   0x1   :  { %11 = vsyncpa [#allocation5], 0  ;;  %s27_s20 = sshll.u32 %s550_s1, 4  ;;  %s445_s21 = smov [#allocation4]   ;;  %s28_s20 = int_to_ptr.hbm [resolvable:$true] %s27_s20 }
   0x2   :  { %s29_s22 = sshll.u32 %s445_s21, 4  ;;  %s17_s25 = sshll.u32 %s549_s0, 4  ;;  %s30_s22 = int_to_ptr.vmem [resolvable:$true] %s29_s22  ;;  %s18_s25 = int_to_ptr.hbm [resolvable:$true] %s17_s25 }
   0x3   :  { %s446_s26 = smov 128   ;;  %s447_s27 = smov 8  }
   0x4   :  { %35 = dma.hbm_to_vmem [thread:$0]  %s28_s20, 640, %s30_s22, [#allocation5], %s446_s26, %s446_s26, %s447_s27  }
   0x5   :  { %s448_s28 = smov [#allocation2]   ;;  %s45_s7 = sshll.u32 %s553_s4, 4  ;;  %s46_s7 = int_to_ptr.hbm [resolvable:$true] %s45_s7 }
   0x6   :  { %s19_s29 = sshll.u32 %s448_s28, 4  ;;  %s449_s1 = smov [#allocation6]   ;;  %s20_s29 = int_to_ptr.vmem [resolvable:$true] %s19_s29 }
   0x7   :  { %22 = dma.hbm_to_vmem [thread:$0]  %s18_s25, 128, %s20_s29, [#allocation3]  }
   0x8   :  { %s47_s8 = sshll.u32 %s449_s1, 4  ;;  %s48_s8 = int_to_ptr.vmem [resolvable:$true] %s47_s8 }
   0x9   :  { %50 = dma.hbm_to_vmem [thread:$0]  %s46_s7, 128, %s48_s8, [#allocation5]  }
   0xa   :  { %441 = dma.done.wait [#allocation3], 128  }
   0xb   :  { %442 = vsyncadd [#allocation3], 4294967168 }
   0xc   :  { %443 = dma.done.wait [#allocation5], 768  }
   0xd   :  { %444 = vsyncadd [#allocation5], 4294966528  ;;  %v450_v0 = vmov 0.015625   ;;  %vm79_vm0 = vcmask 1043456   ;;  %v74_v1 = vld [vmem:[#allocation4 + $0x20] sm:$0xf] }
   0xe   :  { %117 = vmatpush.msra.mxu1 %v450_v0  ;;  %142 = vmatpush.msra.mxu2 %v450_v0  ;;  %v73_v2 = vld [vmem:[#allocation4 + $0x18] sm:$0xff]  ;;  %v72_v3 = vld [vmem:[#allocation4 + $0x10] sm:$0xff]  ;;  %v71_v4 = vld [vmem:[#allocation4 + $0x8] sm:$0xff]  ;;  %vm75_vm1 = vcmask 293888   ;;  %vm105_vm2 = vcmask 523264   ;;  %v451_v13 = vmov 0  }
   0xf   :  { %339 = vmatpush.msk.msra.mxu0 %vm79_vm0, %v74_v1  ;;  %v70_v5 = vld [vmem:[#allocation4] sm:$0xff]  ;;  %v69_v6 = vld [vmem:[#allocation2] sm:$0xff]  ;;  %v357_v7 = vld [vmem:[#allocation6] ss:$0 sm:$0xff]  ;;  %355 = vset.pattern.permute.xlu0 %v451_v13  ;;  %s452_s15 = smov 64   ;;  %vm331_vm13 = vcmask 15360  }
  0x10   :  { %118 = vmatpush.msra.mxu1 %v450_v0  ;;  %143 = vmatpush.msra.mxu2 %v450_v0  ;;  %v183_v14 = vld [vmem:[%s551_s2 + $0x38] sm:$0xff]  ;;  %v182_v15 = vld [vmem:[%s551_s2 + $0x30] sm:$0xff]  ;;  %v181_v16 = vld [vmem:[%s551_s2 + $0x28] sm:$0xff] }
  0x11   :  { %95 = vmatpush.msra.mxu0 %v73_v2  ;;  %356 = vset.pattern.permute.xlu1 %v451_v13  ;;  %v180_v19 = vld [vmem:[%s551_s2 + $0x20] sm:$0xff]  ;;  %v179_v27 = vld [vmem:[%s551_s2 + $0x18] sm:$0xff]  ;;  %v178_v28 = vld [vmem:[%s551_s2 + $0x10] sm:$0xff] }
  0x12   :  { %119 = vmatpush.msra.mxu1 %v450_v0  ;;  %144 = vmatpush.msra.mxu2 %v450_v0  ;;  %v177_v29 = vld [vmem:[%s551_s2 + $0x8] sm:$0xff]  ;;  %v176_v30 = vld [vmem:[%s551_s2] sm:$0xff]  ;;  %v358_v31 = vld [vmem:[#allocation6 + $0x1] ss:$0 sm:$0xff] }
  0x13   :  { %96 = vmatpush.msra.mxu0 %v72_v3  ;;  %199 = vmatpush.msra.mxu3 %v183_v14  ;;  %v359_v34 = vld [vmem:[#allocation6 + $0x2] ss:$0 sm:$0xff]  ;;  %v360_v38 = vld [vmem:[#allocation6 + $0x3] ss:$0 sm:$0xff]  ;;  %v290_v46 = vld [vmem:[%s552_s3 + $0x38] sm:$0xff] }
  0x14   :  { %120 = vmatpush.msra.mxu1 %v450_v0  ;;  %145 = vmatpush.msra.mxu2 %v450_v0  ;;  %v289_v47 = vld [vmem:[%s552_s3 + $0x30] sm:$0xff]  ;;  %v288_v48 = vld [vmem:[%s552_s3 + $0x28] sm:$0xff]  ;;  %v287_v49 = vld [vmem:[%s552_s3 + $0x20] sm:$0xff] }
  0x15   :  { %97 = vmatpush.msra.mxu0 %v71_v4  ;;  %200 = vmatpush.msra.mxu3 %v182_v15  ;;  %v286_v59 = vld [vmem:[%s552_s3 + $0x18] sm:$0xff]  ;;  %v285_v60 = vld [vmem:[%s552_s3 + $0x10] sm:$0xff]  ;;  %v284_v61 = vld [vmem:[%s552_s3 + $0x8] sm:$0xff] }
  0x16   :  { %121 = vmatpush.msra.mxu1 %v450_v0  ;;  %146 = vmatpush.msra.mxu2 %v450_v0  ;;  %v283_v62 = vld [vmem:[%s552_s3] sm:$0xff]  ;;  %v361_v63 = vld [vmem:[#allocation6 + $0x4] ss:$0 sm:$0xff]  ;;  %v362_v1 = vld [vmem:[#allocation6 + $0x5] ss:$0 sm:$0xff] }
  0x17   :  { %98 = vmatpush.msra.mxu0 %v70_v5  ;;  %201 = vmatpush.msra.mxu3 %v181_v16 }
  0x18   :  { %122 = vmatpush.msra.mxu1 %v450_v0  ;;  %147 = vmatpush.msra.mxu2 %v450_v0 }
  0x19   :  { %340 = vmatmul.msk.f32.vlgmr.msra.gmra.mxu0 %vm75_vm1, %v69_v6  ;;  %202 = vmatpush.msra.mxu3 %v180_v19 }
  0x1a   :  { %123 = vmatpush.msra.mxu1 %v450_v0  ;;  %148 = vmatpush.msra.mxu2 %v450_v0 }
  0x1b   :  { %224 = vmatpush.msrb.mxu0 %v450_v0  ;;  %203 = vmatpush.msra.mxu3 %v179_v27 }
  0x1c   :  { %124 = vmatpush.msra.mxu1 %v450_v0  ;;  %149 = vmatpush.msra.mxu2 %v450_v0 }
  0x1d   :  { %225 = vmatpush.msrb.mxu0 %v450_v0  ;;  %204 = vmatpush.msra.mxu3 %v178_v28 }
  0x1e   :  { %249 = vmatpush.msrb.mxu1 %v450_v0  ;;  %302 = vmatpush.msrb.mxu2 %v290_v46 }
  0x1f   :  { %226 = vmatpush.msrb.mxu0 %v450_v0  ;;  %205 = vmatpush.msra.mxu3 %v177_v29 }
  0x20   :  { %250 = vmatpush.msrb.mxu1 %v450_v0  ;;  %303 = vmatpush.msrb.mxu2 %v289_v47 }
  0x21   :  { %227 = vmatpush.msrb.mxu0 %v450_v0  ;;  %206 = vmatpush.msra.mxu3 %v176_v30 }
  0x22   :  { %251 = vmatpush.msrb.mxu1 %v450_v0  ;;  %304 = vmatpush.msrb.mxu2 %v288_v48 }
  0x23   :  { %228 = vmatpush.msrb.mxu0 %v450_v0 }
  0x24   :  { %252 = vmatpush.msrb.mxu1 %v450_v0  ;;  %305 = vmatpush.msrb.mxu2 %v287_v49 }
  0x25   :  { %229 = vmatpush.msrb.mxu0 %v450_v0 }
  0x26   :  { %253 = vmatpush.msrb.mxu1 %v450_v0  ;;  %306 = vmatpush.msrb.mxu2 %v286_v59 }
  0x27   :  { %230 = vmatpush.msrb.mxu0 %v450_v0 }
  0x28   :  { %254 = vmatpush.msrb.mxu1 %v450_v0  ;;  %307 = vmatpush.msrb.mxu2 %v285_v60 }
  0x29   :  { %231 = vmatpush.msrb.mxu0 %v450_v0 }
  0x2a   :  { %255 = vmatpush.msrb.mxu1 %v450_v0  ;;  %308 = vmatpush.msrb.mxu2 %v284_v61 }
  0x2c   :  { %256 = vmatpush.msrb.mxu1 %v450_v0  ;;  %309 = vmatpush.msrb.mxu2 %v283_v62 }
  0x96   :  { %v100_v8 = vpop.f32.mrf.mxu0 }
  0x97   :  { %v104_v9 = vadd.f32 %v357_v7, %v100_v8 }
  0x99   :  { %341 = vmatmul.msk.f32.vlgmr.msra.gmra.mxu1 %vm105_vm2, %v104_v9 }
 0x116   :  { %v126_v10 = vpop.f32.mrf.mxu1 }
 0x117   :  { %v129_v11 = vsub.f32 %v104_v9, %v126_v10 }
 0x119   :  { %v130_v12 = vmul.f32 %v129_v11, %v129_v11 }
 0x11b   :  { %342 = vmatmul.msk.f32.vlgmr.msra.gmra.mxu2 %vm105_vm2, %v130_v12 }
 0x19e   :  { %v151_v17 = vpop.f32.mrf.mxu2 }
 0x19f   :  { %v154_v18 = vadd.f32 1e-05, %v151_v17 }
 0x1a1   :  { %363 = vrsqrt.f32 %v154_v18  ;;  %vm161_vm4 = vweird.f32 %v154_v18 }
 0x1a7   :  { %v364_v20 = vpop.eup %363 }
 0x1a8   :  { %v156_v21 = vmul.f32 %v364_v20, %v154_v18  ;;  %vm162_vm3 = vweird.f32 %v364_v20 }
 0x1a9   :  { %vm163_vm5 = vmor %vm161_vm4, %vm162_vm3 }
 0x1aa   :  { %v157_v22 = vmul.f32 %v364_v20, %v156_v21 }
 0x1ac   :  { %v158_v23 = vmul.f32 0.5, %v157_v22 }
 0x1ae   :  { %v159_v24 = vsub.f32 1.5, %v158_v23 }
 0x1b0   :  { %v160_v25 = vmul.f32 %v364_v20, %v159_v24 }
 0x1b2   :  { %v164_v26 = vsel %vm163_vm5, %v364_v20, %v160_v25 }
 0x1b3   :  { %167 = vperm.xlu0 %355, %v164_v26  }
 0x1bb   :  { %185 = vrot.lane.b32.xlu0 %v100_v8, %s452_s15 }
 0x225   :  { %v168_v32 = vpop.permute.xlu0 %167 }
 0x226   :  { %v170_v33 = vmul.f32 %v168_v32, %v129_v11 }
 0x228   :  { %v172_v35 = vmul.f32 %v358_v31, %v170_v33 }
 0x22a   :  { %v174_v36 = vadd.f32 %v359_v34, %v172_v35 }
 0x22c   :  { %v175_v37 = vmax.f32 %v174_v36, 0.0 }
 0x22d   :  { %v186_v39 = vpop.permute.xlu0 %185 }
 0x22e   :  { %343 = vmatmul.msk.f32.vlgmr.msra.gmra.mxu3 %vm105_vm2, %v175_v37 }
 0x2b1   :  { %v208_v40 = vpop.f32.mrf.mxu3 }
 0x2b2   :  { %v209_v41 = vadd.f32 %v208_v40, %v186_v39 }
 0x2b4   :  { %v212_v42 = vadd.f32 %v360_v38, %v209_v41 }
 0x2b6   :  { %344 = vmatmul.msk.f32.vlgmr.msrb.gmra.mxu0 %vm105_vm2, %v212_v42 }
 0x333   :  { %v233_v43 = vpop.f32.mrf.mxu0 }
 0x334   :  { %v236_v44 = vsub.f32 %v212_v42, %v233_v43 }
 0x336   :  { %v237_v45 = vmul.f32 %v236_v44, %v236_v44 }
 0x338   :  { %345 = vmatmul.msk.f32.vlgmr.msrb.gmra.mxu1 %vm105_vm2, %v237_v45 }
 0x3b5   :  { %v258_v50 = vpop.f32.mrf.mxu1 }
 0x3b6   :  { %v261_v51 = vadd.f32 1e-05, %v258_v50 }
 0x3b8   :  { %365 = vrsqrt.f32 %v261_v51  ;;  %vm268_vm7 = vweird.f32 %v261_v51 }
 0x3be   :  { %v366_v52 = vpop.eup %365 }
 0x3bf   :  { %v263_v53 = vmul.f32 %v366_v52, %v261_v51  ;;  %vm269_vm6 = vweird.f32 %v366_v52 }
 0x3c0   :  { %vm270_vm8 = vmor %vm268_vm7, %vm269_vm6 }
 0x3c1   :  { %v264_v54 = vmul.f32 %v366_v52, %v263_v53 }
 0x3c3   :  { %v265_v55 = vmul.f32 0.5, %v264_v54 }
 0x3c5   :  { %v266_v56 = vsub.f32 1.5, %v265_v55 }
 0x3c7   :  { %v267_v57 = vmul.f32 %v366_v52, %v266_v56 }
 0x3c9   :  { %v271_v58 = vsel %vm270_vm8, %v366_v52, %v267_v57 }
 0x3ca   :  { %274 = vperm.xlu1 %356, %v271_v58  }
 0x43c   :  { %v275_v0 = vpop.permute.xlu1 %274 }
 0x43d   :  { %v277_v2 = vmul.f32 %v275_v0, %v236_v44 }
 0x43f   :  { %v279_v3 = vmul.f32 %v361_v63, %v277_v2 }
 0x441   :  { %v281_v4 = vadd.f32 %v362_v1, %v279_v3 }
 0x443   :  { %v282_v5 = vmax.f32 %v281_v4, 0.0 }
 0x445   :  { %346 = vmatmul.msk.f32.vlgmr.msrb.gmra.mxu2 %vm105_vm2, %v282_v5 }
 0x4c8   :  { %v311_v6 = vpop.f32.mrf.mxu2 }
 0x4c9   :  { %v314_v7 = vand.u32 2147483647, %v311_v6 }
 0x4cb   :  { %v315_v8 = vadd.f32 1.0, %v314_v7 }
 0x4cd   :  { %367 = vrcp.f32 %v315_v8  ;;  %v327_v12 = vand.u32 2147483648, %v315_v8  ;;  %v325_v14 = vand.u32 2147483647, %v315_v8  ;;  %vm321_vm10 = vweird.f32 %v315_v8 }
 0x4cf   :  { %v328_v16 = vor.u32 1.1754944e-38, %v327_v12  ;;  %vm326_vm12 = vcmp.eq.f32.partialorder %v325_v14, 8.507059e+37 }
 0x4d3   :  { %v368_v9 = vpop.eup %367 }
 0x4d4   :  { %v317_v10 = vmul.f32 %v368_v9, %v315_v8  ;;  %vm322_vm9 = vweird.f32 %v368_v9 }
 0x4d5   :  { %vm323_vm11 = vmor %vm321_vm10, %vm322_vm9 }
 0x4d6   :  { %v318_v11 = vsub.f32 1.0, %v317_v10 }
 0x4d8   :  { %v319_v13 = vmul.f32 %v368_v9, %v318_v11 }
 0x4da   :  { %v320_v15 = vadd.f32 %v368_v9, %v319_v13 }
 0x4dc   :  { %v324_v17 = vsel %vm323_vm11, %v368_v9, %v320_v15 }
 0x4dd   :  { %v329_v18 = vsel %vm326_vm12, %v328_v16, %v324_v17 }
 0x4de   :  { %v330_v19 = vmul.f32 %v329_v18, %v311_v6 }
 0x4e0   :  { %332 = vst.msk [vmem:[%s554_s5] sm:$0xff] %vm331_vm13, %v330_v19 }
 0x4e1   :  { %337 = vsyncpa [#allocation3], 1 }
 0x4e2   :  { %338 = vsyncpa [#allocation5], 1 }

</bundles_post_ra>
